<compile_context>
chip_gen: v5e
topology: v5e:2x2
jax: 0.10.0
libtpu: 0.0.40
codegen_flags: <defaults>
</compile_context>

<pallas_src>
import math

import jax
import jax.numpy as jnp
from jax.experimental import pallas as pl
from jax.experimental.pallas import tpu as pltpu

FREQ_EMB_SIZE = 256
HALF = FREQ_EMB_SIZE // 2
MAX_PERIOD = 10000.0


def _round_up(x, m):
    return (x + m - 1) // m * m


def _pick_tile_h(h_pad, budget_bytes=12 * 1024 * 1024):
    """Largest 128-multiple divisor of h_pad whose double-buffered w2 slab fits."""
    for cand in range(h_pad, 127, -128):
        if h_pad % cand == 0 and 2 * h_pad * cand * 2 <= budget_bytes:
            return cand
    return 128


def timestep_embedder_kernel(t_ref, freqs_ref, w1_ref, b1_ref, w2_ref, b2_ref,
                             o_ref, h_ref):
    # --- first Linear + SiLU: once per row tile, kept resident in scratch ---
    @pl.when(pl.program_id(1) == 0)
    def _():
        t = t_ref[...].astype(jnp.float32)              # (TILE_N, 1)
        args = t * freqs_ref[...]                       # (TILE_N, HALF)
        cos_a = jnp.cos(args).astype(w1_ref.dtype)      # bf16 MXU operands
        sin_a = jnp.sin(args).astype(w1_ref.dtype)
        # emb = [cos, sin]; split K=256 into two 128-deep matmuls instead of
        # materializing the concatenated (TILE_N, 256) intermediate.
        h = jnp.dot(cos_a, w1_ref[:HALF, :],
                    preferred_element_type=jnp.float32)
        h = h + jnp.dot(sin_a, w1_ref[HALF:, :],
                        preferred_element_type=jnp.float32)
        h = h + b1_ref[...]                             # (TILE_N, H_pad) f32
        silu = h * jax.nn.sigmoid(h)                    # SiLU (EUP)
        h_ref[...] = silu.astype(h_ref.dtype)           # store bf16 once

    # --- second Linear, column-tiled over H ---
    out = jnp.dot(h_ref[...], w2_ref[...], preferred_element_type=jnp.float32)
    o_ref[...] = (out + b2_ref[...]).astype(o_ref.dtype)


def timestep_embedder(t, w1, b1, w2, b2, *, max_tile_n=512):
    """t: (N,). w1: (256, H), b1: (H,), w2: (H, H), b2: (H,). Returns (N, H) f32.

    Weights are stored (in_features, out_features), i.e. y = x @ W + b
    (equivalent to PyTorch y = x @ W_pt.T + b).
    """
    n = t.shape[0]
    hidden = w1.shape[1]
    assert w1.shape == (FREQ_EMB_SIZE, hidden)
    assert w2.shape == (hidden, hidden)

    # --- padding / tile selection ---
    h_pad = _round_up(hidden, 128)                      # lane-dense output
    tile_h = _pick_tile_h(h_pad)
    tile_n = min(max_tile_n, _round_up(n, 8))
    n_pad = _round_up(n, tile_n)

    # --- pad operands; weights in bf16 (halves HBM traffic, native MXU path) ---
    t2d = jnp.zeros((n_pad, 1), jnp.float32).at[:n, 0].set(t.astype(jnp.float32))
    w1_p = (jnp.zeros((FREQ_EMB_SIZE, h_pad), jnp.bfloat16)
            .at[:, :hidden].set(w1.astype(jnp.bfloat16)))
    b1_p = jnp.zeros((1, h_pad), jnp.float32).at[0, :hidden].set(
        b1.astype(jnp.float32))
    w2_p = (jnp.zeros((h_pad, h_pad), jnp.bfloat16)
            .at[:hidden, :hidden].set(w2.astype(jnp.bfloat16)))
    b2_p = jnp.zeros((1, h_pad), jnp.float32).at[0, :hidden].set(
        b2.astype(jnp.float32))

    # Precomputed sinusoidal frequencies (hoisted out of the kernel).
    freqs = jnp.exp(
        -math.log(MAX_PERIOD) * jnp.arange(HALF, dtype=jnp.float32) / HALF
    ).reshape(1, HALF)

    grid = (n_pad // tile_n, h_pad // tile_h)

    # Footprint-derived VMEM limit (double-buffered inputs/outputs + scratch).
    vmem_bytes = (
        2 * (tile_n * 1 * 4)                    # t
        + 2 * (HALF * 4)                        # freqs
        + 2 * (FREQ_EMB_SIZE * h_pad * 2)       # w1 (bf16)
        + 2 * (h_pad * 4)                       # b1
        + 2 * (h_pad * tile_h * 2)              # w2 tile (bf16)
        + 2 * (tile_h * 4)                      # b2 tile
        + 2 * (tile_n * tile_h * 4)             # out tile
        + tile_n * h_pad * 2                    # SiLU(h) scratch (bf16)
    )
    vmem_limit = int(min(max(2 * vmem_bytes, 16 * 1024 * 1024),
                         48 * 1024 * 1024))

    cost = pl.CostEstimate(
        flops=2 * n_pad * (FREQ_EMB_SIZE * h_pad + h_pad * h_pad),
        transcendentals=n_pad * (FREQ_EMB_SIZE + h_pad),
        bytes_accessed=(t2d.size * 4 + freqs.size * 4 + w1_p.size * 2
                        + b1_p.size * 4 + w2_p.size * 2 + b2_p.size * 4
                        + n_pad * h_pad * 4),
    )

    out = pl.pallas_call(
        timestep_embedder_kernel,
        out_shape=jax.ShapeDtypeStruct((n_pad, h_pad), jnp.float32),
        grid_spec=pltpu.PrefetchScalarGridSpec(
            num_scalar_prefetch=0,
            grid=grid,
            in_specs=[
                pl.BlockSpec((tile_n, 1), lambda i, j: (i, 0)),              # t
                pl.BlockSpec((1, HALF), lambda i, j: (0, 0)),                # freqs
                pl.BlockSpec((FREQ_EMB_SIZE, h_pad), lambda i, j: (0, 0)),   # w1
                pl.BlockSpec((1, h_pad), lambda i, j: (0, 0)),               # b1
                pl.BlockSpec((h_pad, tile_h), lambda i, j: (0, j)),          # w2
                pl.BlockSpec((1, tile_h), lambda i, j: (0, j)),              # b2
            ],
            out_specs=pl.BlockSpec((tile_n, tile_h), lambda i, j: (i, j)),
            scratch_shapes=[pltpu.VMEM((tile_n, h_pad), jnp.bfloat16)],      # SiLU(h)
        ),
        compiler_params=pltpu.CompilerParams(
            dimension_semantics=("parallel", "arbitrary"),
            vmem_limit_bytes=vmem_limit,
        ),
        cost_estimate=cost,
    )(t2d, freqs, w1_p, b1_p, w2_p, b2_p)

    return out[:n, :hidden]


def _reference(t, w1, b1, w2, b2):
    """Pure-JAX f32 reference mirroring the PyTorch module."""
    freqs = jnp.exp(
        -math.log(MAX_PERIOD) * jnp.arange(HALF, dtype=jnp.float32) / HALF
    )
    args = t[:, None].astype(jnp.float32) * freqs[None]
    emb = jnp.concatenate([jnp.cos(args), jnp.sin(args)], axis=-1)
    h = emb @ w1 + b1
    h = h * jax.nn.sigmoid(h)
    return h @ w2 + b2


if __name__ == "__main__":
    hidden_size = 32
    batch = 2

    key = jax.random.PRNGKey(0)
    k_t, k_w1, k_b1, k_w2, k_b2 = jax.random.split(key, 5)

    # Deterministic synthetic parameters (shapes from nn.Linear in __init__).
    t = jax.random.uniform(k_t, (batch,), jnp.float32) * 1000.0
    w1 = jax.random.normal(k_w1, (FREQ_EMB_SIZE, hidden_size), jnp.float32) * 0.02
    b1 = jax.random.normal(k_b1, (hidden_size,), jnp.float32) * 0.02
    w2 = jax.random.normal(k_w2, (hidden_size, hidden_size), jnp.float32) * 0.02
    b2 = jax.random.normal(k_b2, (hidden_size,), jnp.float32) * 0.02

    out = timestep_embedder(t, w1, b1, w2, b2)
    out = jax.block_until_ready(out)

    ref = _reference(t, w1, b1, w2, b2)
    assert out.shape == (batch, hidden_size)
    # bf16 weights / bf16 MXU operands with f32 accumulation -> loosened tol.
    assert jnp.allclose(out, ref, atol=1e-2, rtol=1e-2), "mismatch vs reference"

    print("KERNEL_OK")
</pallas_src>

<mosaic_0001>
module attributes {stable_mosaic.version = 11 : i64} {
  func.func @timestep_embedder_kernel(%arg0: i32, %arg1: i32, %arg2: memref<8x1xf32, #tpu.memory_space<vmem>>, %arg3: memref<1x128xf32, #tpu.memory_space<vmem>>, %arg4: memref<256x128xbf16, #tpu.memory_space<vmem>>, %arg5: memref<1x128xf32, #tpu.memory_space<vmem>>, %arg6: memref<128x128xbf16, #tpu.memory_space<vmem>>, %arg7: memref<1x128xf32, #tpu.memory_space<vmem>>, %arg8: memref<8x128xf32, #tpu.memory_space<vmem>>, %arg9: memref<8x128xbf16, #tpu.memory_space<vmem>>) attributes {dimension_semantics = [#tpu.dimension_semantics<parallel>, #tpu.dimension_semantics<arbitrary>], iteration_bounds = array<i64: 1, 1>, scalar_prefetch = 0 : i64, scratch_operands = 1 : i64, tpu.core_type = #tpu.core_type<tc>, window_params = [{transform_indices = @transform_0, window_bounds = array<i64: 8, 1>}, {pipeline_mode = #tpu.pipeline_mode<synchronous>, transform_indices = @transform_1, window_bounds = array<i64: 1, 128>}, {pipeline_mode = #tpu.pipeline_mode<synchronous>, transform_indices = @transform_2, window_bounds = array<i64: 256, 128>}, {pipeline_mode = #tpu.pipeline_mode<synchronous>, transform_indices = @transform_3, window_bounds = array<i64: 1, 128>}, {transform_indices = @transform_4, window_bounds = array<i64: 128, 128>}, {transform_indices = @transform_5, window_bounds = array<i64: 1, 128>}, {transform_indices = @transform_6, window_bounds = array<i64: 8, 128>}]} {
    %c0_i32 = arith.constant 0 : i32
    %0 = arith.cmpi eq, %arg1, %c0_i32 : i32
    %1 = arith.extui %0 : i1 to i32
    %c0_i32_0 = arith.constant 0 : i32
    %2 = arith.cmpi ne, %1, %c0_i32_0 : i32
    scf.if %2 {
      %c0_8 = arith.constant 0 : index
      %c0_9 = arith.constant 0 : index
      %10 = vector.load %arg2[%c0_8, %c0_9] : memref<8x1xf32, #tpu.memory_space<vmem>>, vector<8x1xf32>
      %c0_10 = arith.constant 0 : index
      %c0_11 = arith.constant 0 : index
      %11 = vector.load %arg3[%c0_10, %c0_11] : memref<1x128xf32, #tpu.memory_space<vmem>>, vector<1x128xf32>
      %12 = vector.broadcast %10 : vector<8x1xf32> to vector<8x128xf32>
      %13 = vector.broadcast %11 : vector<1x128xf32> to vector<8x128xf32>
      %14 = arith.mulf %12, %13 : vector<8x128xf32>
      %15 = math.cos %14 : vector<8x128xf32>
      %16 = arith.truncf %15 : vector<8x128xf32> to vector<8x128xbf16>
      %17 = math.sin %14 : vector<8x128xf32>
      %18 = arith.truncf %17 : vector<8x128xf32> to vector<8x128xbf16>
      %c0_12 = arith.constant 0 : index
      %c0_13 = arith.constant 0 : index
      %19 = vector.load %arg4[%c0_12, %c0_13] : memref<256x128xbf16, #tpu.memory_space<vmem>>, vector<128x128xbf16>
      %cst_14 = arith.constant dense<0.000000e+00> : vector<8x128xf32>
      %20 = tpu.matmul %16, %19, %cst_14 {dimension_numbers = #tpu.dot_dimension_numbers<[1], [0], [0], [1], [0, 0, 1, 1], [], []>} : vector<8x128xbf16>, vector<128x128xbf16>, vector<8x128xf32> -> vector<8x128xf32>
      %c128 = arith.constant 128 : index
      %c0_15 = arith.constant 0 : index
      %21 = vector.load %arg4[%c128, %c0_15] : memref<256x128xbf16, #tpu.memory_space<vmem>>, vector<128x128xbf16>
      %cst_16 = arith.constant dense<0.000000e+00> : vector<8x128xf32>
      %22 = tpu.matmul %18, %21, %cst_16 {dimension_numbers = #tpu.dot_dimension_numbers<[1], [0], [0], [1], [0, 0, 1, 1], [], []>} : vector<8x128xbf16>, vector<128x128xbf16>, vector<8x128xf32> -> vector<8x128xf32>
      %23 = arith.addf %20, %22 : vector<8x128xf32>
      %c0_17 = arith.constant 0 : index
      %c0_18 = arith.constant 0 : index
      %24 = vector.load %arg5[%c0_17, %c0_18] : memref<1x128xf32, #tpu.memory_space<vmem>>, vector<1x128xf32>
      %25 = vector.broadcast %24 : vector<1x128xf32> to vector<8x128xf32>
      %26 = arith.addf %23, %25 : vector<8x128xf32>
      %27 = arith.negf %26 : vector<8x128xf32>
      %28 = math.exp %27 : vector<8x128xf32>
      %cst_19 = arith.constant 1.000000e+00 : f32
      %29 = vector.broadcast %cst_19 : f32 to vector<8x128xf32>
      %30 = arith.addf %29, %28 : vector<8x128xf32>
      %31 = arith.divf %29, %30 : vector<8x128xf32>
      %32 = arith.mulf %26, %31 : vector<8x128xf32>
      %33 = arith.truncf %32 : vector<8x128xf32> to vector<8x128xbf16>
      %c0_20 = arith.constant 0 : index
      %c0_21 = arith.constant 0 : index
      %34 = vector.load %arg9[%c0_20, %c0_21] : memref<8x128xbf16, #tpu.memory_space<vmem>>, vector<8x128xbf16>
      tpu.vector_store %arg9[%c0_20, %c0_21], %33 {strides = array<i32>} : memref<8x128xbf16, #tpu.memory_space<vmem>>, vector<8x128xbf16>,
    } else {
    }
    %c0 = arith.constant 0 : index
    %c0_1 = arith.constant 0 : index
    %3 = vector.load %arg9[%c0, %c0_1] : memref<8x128xbf16, #tpu.memory_space<vmem>>, vector<8x128xbf16>
    %c0_2 = arith.constant 0 : index
    %c0_3 = arith.constant 0 : index
    %4 = vector.load %arg6[%c0_2, %c0_3] : memref<128x128xbf16, #tpu.memory_space<vmem>>, vector<128x128xbf16>
    %cst = arith.constant dense<0.000000e+00> : vector<8x128xf32>
    %5 = tpu.matmul %3, %4, %cst {dimension_numbers = #tpu.dot_dimension_numbers<[1], [0], [0], [1], [0, 0, 1, 1], [], []>} : vector<8x128xbf16>, vector<128x128xbf16>, vector<8x128xf32> -> vector<8x128xf32>
    %c0_4 = arith.constant 0 : index
    %c0_5 = arith.constant 0 : index
    %6 = vector.load %arg7[%c0_4, %c0_5] : memref<1x128xf32, #tpu.memory_space<vmem>>, vector<1x128xf32>
    %7 = vector.broadcast %6 : vector<1x128xf32> to vector<8x128xf32>
    %8 = arith.addf %5, %7 : vector<8x128xf32>
    %c0_6 = arith.constant 0 : index
    %c0_7 = arith.constant 0 : index
    %9 = vector.load %arg8[%c0_6, %c0_7] : memref<8x128xf32, #tpu.memory_space<vmem>>, vector<8x128xf32>
    tpu.vector_store %arg8[%c0_6, %c0_7], %8 {strides = array<i32>} : memref<8x128xf32, #tpu.memory_space<vmem>>, vector<8x128xf32>,
    return
  }
  func.func @transform_0(%arg0: i32, %arg1: i32) -> (i32, i32) {
    %c0_i32 = arith.constant 0 : i32
    %c0_i32_0 = arith.constant 0 : i32
    return %arg0, %c0_i32 : i32, i32
  }
  func.func @transform_1(%arg0: i32, %arg1: i32) -> (i32, i32) {
    %c0_i32 = arith.constant 0 : i32
    %c0_i32_0 = arith.constant 0 : i32
    %c0_i32_1 = arith.constant 0 : i32
    return %c0_i32, %c0_i32_0 : i32, i32
  }
  func.func @transform_2(%arg0: i32, %arg1: i32) -> (i32, i32) {
    %c0_i32 = arith.constant 0 : i32
    %c0_i32_0 = arith.constant 0 : i32
    %c0_i32_1 = arith.constant 0 : i32
    return %c0_i32, %c0_i32_0 : i32, i32
  }
  func.func @transform_3(%arg0: i32, %arg1: i32) -> (i32, i32) {
    %c0_i32 = arith.constant 0 : i32
    %c0_i32_0 = arith.constant 0 : i32
    %c0_i32_1 = arith.constant 0 : i32
    return %c0_i32, %c0_i32_0 : i32, i32
  }
  func.func @transform_4(%arg0: i32, %arg1: i32) -> (i32, i32) {
    %c0_i32 = arith.constant 0 : i32
    %c0_i32_0 = arith.constant 0 : i32
    return %c0_i32, %arg1 : i32, i32
  }
  func.func @transform_5(%arg0: i32, %arg1: i32) -> (i32, i32) {
    %c0_i32 = arith.constant 0 : i32
    %c0_i32_0 = arith.constant 0 : i32
    return %c0_i32, %arg1 : i32, i32
  }
  func.func @transform_6(%arg0: i32, %arg1: i32) -> (i32, i32) {
    %c0_i32 = arith.constant 0 : i32
    return %arg0, %arg1 : i32, i32
  }
}

</mosaic_0001>

<bundles_post_ra>
// kernel: tpu_custom_call.1
= control target key start
LH: loop header
LB: loop body
LE: loop exit
PB: predicated region body
PF: predicated region fallthrough
CT: control target
= control target key end

     0   :  { %11 = vsyncpa [#allocation4], 0  ;;  %s1027_s0 = inlined_call_operand.vmem [shape: f32[8,1], index: 0, kind: input, shape index: {}]   ;;  %s1028_s1 = inlined_call_operand.vmem [shape: f32[1,128], index: 1, kind: input, shape index: {}]   ;;  %s1029_s2 = inlined_call_operand.hbm [shape: bf16[256,128], index: 2, kind: input, shape index: {}]   ;;  %s1030_s3 = inlined_call_operand.vmem [shape: f32[1,128], index: 3, kind: input, shape index: {}]   ;;  %s1031_s4 = inlined_call_operand.hbm [shape: bf16[128,128], index: 4, kind: input, shape index: {}]   ;;  %s1032_s5 = inlined_call_operand.vmem [shape: f32[1,128], index: 5, kind: input, shape index: {}]   ;;  %s1033_s6 = inlined_call_operand.hbm [shape: f32[8,128], index: 6, kind: output, shape index: {}]  }
   0x1   :  { %12 = vsyncpa [#allocation7], 0 }
   0x2   :  { %13 = vsyncpa [#allocation5], 0  ;;  %s22_s23 = sshll.u32 %s1029_s2, 4  ;;  %s889_s24 = smov [#allocation3]   ;;  %s23_s23 = int_to_ptr.hbm [resolvable:$true] %s22_s23 }
   0x3   :  { %s24_s25 = sshll.u32 %s889_s24, 4  ;;  %s37_s28 = sshll.u32 %s1031_s4, 4  ;;  %s25_s25 = int_to_ptr.vmem [resolvable:$true] %s24_s25  ;;  %s38_s28 = int_to_ptr.hbm [resolvable:$true] %s37_s28 }
   0x4   :  { %s890_s29 = smov 64   ;;  %s891_s30 = smov 4  }
   0x5   :  { %30 = dma.hbm_to_vmem [thread:$0]  %s23_s23, 2048, %s25_s25, [#allocation4], %s890_s29, %s890_s29, %s891_s30  }
   0x6   :  { %s892_s7 = smov [#allocation6]  }
   0x7   :  { %s39_s8 = sshll.u32 %s892_s7, 4  ;;  %s40_s8 = int_to_ptr.vmem [resolvable:$true] %s39_s8 }
   0x8   :  { %45 = dma.hbm_to_vmem [thread:$0]  %s38_s28, 1024, %s40_s8, [#allocation7], %s890_s29, %s890_s29, %s891_s30  }
   0x9   :  { %883 = dma.done.wait [#allocation4], 2048  }
   0xa   :  { %884 = vsyncadd [#allocation4], 4294965248 }
   0xb   :  { %885 = dma.done.wait [#allocation7], 1024  }
   0xc   :  { %886 = vsyncadd [#allocation7], 4294966272  ;;  %v893_v0 = vmov 0   ;;  %v60_v1 = vld [vmem:[%s1027_s0] sm:$0xff]  ;;  %v781_v7 = vld [vmem:[#allocation3 + $0x70] sm:$0xff]  ;;  %s900_s12 = smov [#allocation8]  }
   0xd   :  { %803 = vset.pattern.permute.xlu0 %v893_v0  ;;  %v804_v2 = vld [vmem:[%s1028_s1] ss:$0 sm:$0xff]  ;;  %v773_v8 = vld [vmem:[#allocation3 + $0x30] sm:$0xff]  ;;  %v780_v11 = vld [vmem:[#allocation3 + $0x68] sm:$0xff]  ;;  %v894_v26 = vmov 683565275  }
   0xe   :  { %64 = vperm.xlu0 %803, %v60_v1   ;;  %v782_v3 = vld [vmem:[#allocation3 + $0x78] sm:$0xff]  ;;  %v772_v12 = vld [vmem:[#allocation3 + $0x28] sm:$0xff]  ;;  %v779_v16 = vld [vmem:[#allocation3 + $0x60] sm:$0xff]  ;;  %v895_v28 = vmov 2475754826   ;;  %s651_s13 = sshll.u32 %s900_s12, 4  ;;  %s652_s13 = int_to_ptr.vmem [resolvable:$true] %s651_s13 }
   0xf   :  { %v774_v4 = vld [vmem:[#allocation3 + $0x38] sm:$0xff]  ;;  %462 = vmatpush.bf16.msra.mxu0 %v782_v3  ;;  %v771_v17 = vld [vmem:[#allocation3 + $0x20] sm:$0xff]  ;;  %v896_v31 = vmov 2131351028   ;;  %v897_v34 = vmov 2102212464  }
  0x10   :  { %523 = vmatpush.bf16.msra.mxu1 %v774_v4  ;;  %v778_v21 = vld [vmem:[#allocation3 + $0x58] sm:$0xff]  ;;  %v777_v36 = vld [vmem:[#allocation3 + $0x50] sm:$0xff]  ;;  %v898_v38 = vmov 920167782   ;;  %v899_v41 = vmov 1326507024  }
  0x11   :  { %v770_v22 = vld [vmem:[#allocation3 + $0x18] sm:$0xff]  ;;  %v769_v43 = vld [vmem:[#allocation3 + $0x10] sm:$0xff]  ;;  %v776_v52 = vld [vmem:[#allocation3 + $0x48] sm:$0xff]  ;;  %s653_s16 = sshll.u32 %s1033_s6, 4  ;;  %s654_s16 = int_to_ptr.hbm [resolvable:$true] %s653_s16 }
  0x12   :  { %v768_v55 = vld [vmem:[#allocation3 + $0x8] sm:$0xff]  ;;  %v767_v4 = vld [vmem:[#allocation3] sm:$0xff] }
  0x13   :  { %463 = vmatpush.bf16.msra.mxu0 %v781_v7 }
  0x14   :  { %524 = vmatpush.bf16.msra.mxu1 %v773_v8 }
  0x17   :  { %464 = vmatpush.bf16.msra.mxu0 %v780_v11 }
  0x18   :  { %525 = vmatpush.bf16.msra.mxu1 %v772_v12 }
  0x1b   :  { %465 = vmatpush.bf16.msra.mxu0 %v779_v16 }
  0x1c   :  { %526 = vmatpush.bf16.msra.mxu1 %v771_v17 }
  0x1f   :  { %466 = vmatpush.bf16.msra.mxu0 %v778_v21 }
  0x20   :  { %527 = vmatpush.bf16.msra.mxu1 %v770_v22 }
  0x23   :  { %467 = vmatpush.bf16.msra.mxu0 %v777_v36 }
  0x24   :  { %528 = vmatpush.bf16.msra.mxu1 %v769_v43 }
  0x27   :  { %468 = vmatpush.bf16.msra.mxu0 %v776_v52 }
  0x28   :  { %529 = vmatpush.bf16.msra.mxu1 %v768_v55 }
  0x2c   :  { %530 = vmatpush.bf16.msra.mxu1 %v767_v4 }
  0x80   :  { %v65_v5 = vpop.permute.xlu0 %64 }
  0x81   :  { %v949_v6 = vmul.f32 %v804_v2, %v65_v5  ;;  %v775_v2 = vld [vmem:[#allocation3 + $0x40] sm:$0xff] }
  0x82   :  { %469 = vmatpush.bf16.msra.mxu0 %v775_v2 }
  0x83   :  { %v74_v9 = vand.u32 2139095040, %v949_v6  ;;  %v71_v14 = vand.u32 2147483647, %v949_v6  ;;  %vm73_vm12 = vcmp.lt.s32.totalorder %v949_v6, 0 }
  0x85   :  { %v75_v10 = vshrl.u32 %v74_v9, 23  ;;  %v78_v18 = vand.u32 8388607, %v71_v14  ;;  %vm72_vm13 = vcmp.le.f32.partialorder %v71_v14, 0.7853982 }
  0x87   :  { %v664_v13 = vadd.s32 4294967169, %v75_v10  ;;  %v79_v24 = vor.u32 8388608, %v78_v18 }
  0x89   :  { %v81_v15 = vadd.s32 1, %v664_v13  ;;  %v970_v49 = vshll.u32 %v79_v24, 8 }
  0x8b   :  { %vm82_vm0 = vcmp.gt.s32.totalorder %v81_v15, 0  ;;  %v120_v60 = vand.u32 65535, %v970_v49  ;;  %v121_v3 = vshrl.u32 %v970_v49, 16 }
  0x8c   :  { %v83_v19 = vsel %vm82_vm0, %v81_v15, 0 }
  0x8d   :  { %v85_v20 = vand.u32 31, %v83_v19  ;;  %v957_v25 = vshrl.u32 %v83_v19, 5 }
  0x8f   :  { %v955_v23 = vsub.s32 32, %v85_v20  ;;  %v88_v27 = vshll.u32 %v894_v26, %v85_v20  ;;  %v91_v29 = vshll.u32 %v895_v28, %v85_v20  ;;  %v94_v33 = vshll.u32 %v896_v31, %v85_v20 }
  0x90   :  { %v97_v37 = vshll.u32 %v897_v34, %v85_v20  ;;  %v100_v40 = vshll.u32 %v898_v38, %v85_v20  ;;  %vm103_vm1 = vcmp.lt.s32.totalorder %v957_v25, 1  ;;  %vm106_vm2 = vcmp.lt.s32.totalorder %v957_v25, 4 }
  0x91   :  { %v89_v30 = vshrl.u32 %v895_v28, %v955_v23  ;;  %v92_v32 = vshrl.u32 %v896_v31, %v955_v23  ;;  %v95_v35 = vshrl.u32 %v897_v34, %v955_v23  ;;  %v98_v39 = vshrl.u32 %v898_v38, %v955_v23 }
  0x92   :  { %v101_v42 = vshrl.u32 %v899_v41, %v955_v23  ;;  %vm105_vm3 = vcmp.lt.s32.totalorder %v957_v25, 3  ;;  %vm104_vm4 = vcmp.lt.s32.totalorder %v957_v25, 2 }
  0x93   :  { %v965_v44 = vor.u32 %v89_v30, %v88_v27  ;;  %v967_v45 = vor.u32 %v92_v32, %v91_v29  ;;  %v96_v46 = vor.u32 %v95_v35, %v94_v33  ;;  %v99_v47 = vor.u32 %v98_v39, %v97_v37 }
  0x94   :  { %v102_v48 = vor.u32 %v101_v42, %v100_v40  ;;  %v87_v29 = vshrl.u32 %v894_v26, %v955_v23 }
  0x95   :  { %v111_v50 = vsel %vm103_vm1, %v965_v44, %v967_v45  ;;  %v115_v51 = vsel %vm103_vm1, %v967_v45, %v96_v46  ;;  %v112_v53 = vsel %vm106_vm2, %v99_v47, 920167782  ;;  %v108_v21 = vsel %vm106_vm2, %v96_v46, 2102212464 }
  0x96   :  { %v116_v54 = vsel %vm106_vm2, %v102_v48, 1326507024  ;;  %v113_v56 = vsel %vm105_vm3, %v96_v46, %v112_v53  ;;  %v107_v36 = vsel %vm103_vm1, %v87_v29, %v965_v44  ;;  %v109_v37 = vsel %vm105_vm3, %v967_v45, %v108_v21 }
  0x97   :  { %v117_v57 = vsel %vm105_vm3, %v99_v47, %v116_v54  ;;  %v114_v58 = vsel %vm104_vm4, %v111_v50, %v113_v56  ;;  %v110_v26 = vsel %vm104_vm4, %v107_v36, %v109_v37 }
  0x98   :  { %v118_v59 = vsel %vm104_vm4, %v115_v51, %v117_v57  ;;  %v144_v63 = vand.u32 65535, %v114_v58  ;;  %v145_v1 = vshrl.u32 %v114_v58, 16  ;;  %v164_v46 = vmul.u32 %v970_v49, %v110_v26 }
  0x99   :  { %v122_v61 = vand.u32 65535, %v118_v59  ;;  %v123_v62 = vshrl.u32 %v118_v59, 16  ;;  %vm214_vm4 = vweird.f32 %v949_v6 }
  0x9a   :  { %v147_v7 = vmul.u32 %v145_v1, %v120_v60  ;;  %v148_v9 = vmul.u32 %v144_v63, %v121_v3  ;;  %v146_v12 = vmul.u32 %v144_v63, %v120_v60  ;;  %v149_v16 = vmul.u32 %v145_v1, %v121_v3 }
  0x9b   :  { %v125_v5 = vmul.u32 %v123_v62, %v120_v60  ;;  %v126_v8 = vmul.u32 %v122_v61, %v121_v3  ;;  %v124_v10 = vmul.u32 %v122_v61, %v120_v60  ;;  %v127_v15 = vmul.u32 %v123_v62, %v121_v3 }
  0x9c   :  { %v150_v13 = vshll.u32 %v147_v7, 16  ;;  %v152_v18 = vshll.u32 %v148_v9, 16  ;;  %v151_v34 = vshrl.u32 %v147_v7, 16  ;;  %v153_v40 = vshrl.u32 %v148_v9, 16 }
  0x9d   :  { %v128_v11 = vshll.u32 %v125_v5, 16  ;;  %v130_v17 = vshll.u32 %v126_v8, 16  ;;  %v129_v32 = vshrl.u32 %v125_v5, 16  ;;  %v131_v38 = vshrl.u32 %v126_v8, 16 }
  0x9e   :  { %vm154_vm6 = vc.u32 %v146_v12, %v150_v13  ;;  %v156_v20 = vadd.s32 %v150_v13, %v146_v12 }
  0x9f   :  { %vm132_vm5 = vc.u32 %v124_v10, %v128_v11  ;;  %v134_v19 = vadd.s32 %v128_v11, %v124_v10  ;;  %v155_v24 = vsel %vm154_vm6, 1, %v893_v0 }
  0xa0   :  { %v133_v22 = vsel %vm132_vm5, 1, %v893_v0  ;;  %v157_v28 = vadd.s32 %v155_v24, %v149_v16  ;;  %vm158_vm8 = vc.u32 %v156_v20, %v152_v18  ;;  %v160_v41 = vadd.s32 %v156_v20, %v152_v18 }
  0xa1   :  { %v135_v27 = vadd.s32 %v133_v22, %v127_v15  ;;  %vm136_vm7 = vc.u32 %v134_v19, %v130_v17  ;;  %v159_v31 = vsel %vm158_vm8, 1, %v893_v0 }
  0xa2   :  { %v137_v30 = vsel %vm136_vm7, 1, %v893_v0  ;;  %v161_v35 = vadd.s32 %v159_v31, %v157_v28 }
  0xa3   :  { %v139_v33 = vadd.s32 %v137_v30, %v135_v27 }
  0xa4   :  { %v162_v23 = vadd.s32 %v161_v35, %v151_v34 }
  0xa5   :  { %v140_v39 = vadd.s32 %v139_v33, %v129_v32 }
  0xa6   :  { %v163_v42 = vadd.s32 %v162_v23, %v153_v40 }
  0xa7   :  { %v141_v0 = vadd.s32 %v140_v39, %v131_v38 }
  0xa8   :  { %v167_v43 = vadd.s32 1, %v163_v42 }
  0xa9   :  { %vm166_vm9 = vc.u32 %v141_v0, %v160_v41  ;;  %v165_v56 = vadd.s32 %v160_v41, %v141_v0  ;;  %v790_v0 = vld [vmem:[#allocation6 + $0x38] sm:$0xff]  ;;  %v789_v41 = vld [vmem:[#allocation6 + $0x30] sm:$0xff] }
  0xaa   :  { %v168_v47 = vsel %vm166_vm9, %v167_v43, %v163_v42  ;;  %632 = vmatpush.bf16.msra.mxu2 %v790_v0  ;;  %v788_v42 = vld [vmem:[#allocation6 + $0x28] sm:$0xff]  ;;  %v787_v43 = vld [vmem:[#allocation6 + $0x20] sm:$0xff] }
  0xab   :  { %v169_v44 = vadd.s32 %v168_v47, %v164_v46  ;;  %v786_v46 = vld [vmem:[#allocation6 + $0x18] sm:$0xff] }
  0xad   :  { %v170_v48 = vadd.s32 536870912, %v169_v44 }
  0xae   :  { %633 = vmatpush.bf16.msra.mxu2 %v789_v41 }
  0xaf   :  { %v171_v50 = vshrl.u32 %v170_v48, 30 }
  0xb1   :  { %v172_v51 = vshll.u32 %v171_v50, 30  ;;  %v195_v7 = vsub.s32 4, %v171_v50 }
  0xb2   :  { %634 = vmatpush.bf16.msra.mxu2 %v788_v42 }
  0xb3   :  { %v173_v45 = vsub.s32 %v169_v44, %v172_v51  ;;  %v196_v12 = vsel %vm73_vm12, %v195_v7, %v171_v50  ;;  %v785_v50 = vld [vmem:[#allocation6 + $0x10] sm:$0xff]  ;;  %v806_v7 = vld [vmem:[%s1032_s5] ss:$0 sm:$0xff] }
  0xb4   :  { %v198_v16 = vsel %vm72_vm13, 0, %v196_v12 }
  0xb5   :  { %vm174_vm10 = vcmp.lt.s32.totalorder %v173_v45, 0  ;;  %v175_v52 = vsub.s32 0, %v173_v45  ;;  %v370_v21 = vadd.s32 3, %v198_v16  ;;  %v215_v28 = vand.u32 3, %v198_v16 }
  0xb6   :  { %635 = vmatpush.bf16.msra.mxu2 %v787_v43 }
  0xb7   :  { %v176_v53 = vsel %vm174_vm10, %v175_v52, %v173_v45  ;;  %v371_v29 = vand.u32 3, %v370_v21  ;;  %vm216_vm14 = vcmp.lt.s32.totalorder %v215_v28, 2  ;;  %vm217_vm15 = vcmp.eq.s32.totalorder %v215_v28, 0  ;;  %v784_v52 = vld [vmem:[#allocation6 + $0x8] sm:$0xff] }
  0xb8   :  { %v177_v54 = vclz %v176_v53  ;;  %vm220_vm3 = vcmp.eq.s32.totalorder %v215_v28, 2 }
  0xb9   :  { %vm372_vm0 = vcmp.lt.s32.totalorder %v371_v29, 2  ;;  %vm373_vm1 = vcmp.eq.s32.totalorder %v371_v29, 0  ;;  %vm376_vm2 = vcmp.eq.s32.totalorder %v371_v29, 2 }
  0xba   :  { %v665_v55 = vadd.s32 4294967294, %v177_v54  ;;  %636 = vmatpush.bf16.msra.mxu2 %v786_v46 }
  0xbc   :  { %vm666_vm11 = vcmp.lt.s32.totalorder %v665_v55, 0 }
  0xbd   :  { %v180_v25 = vsel %vm666_vm11, 0, %v665_v55  ;;  %v783_v55 = vld [vmem:[#allocation6] sm:$0xff] }
  0xbe   :  { %v181_v57 = vsub.s32 32, %v180_v25  ;;  %v185_v58 = vsub.s32 4294967266, %v180_v25  ;;  %v182_v59 = vshll.u32 %v173_v45, %v180_v25  ;;  %637 = vmatpush.bf16.msra.mxu2 %v785_v50 }
  0xc0   :  { %v183_v60 = vshrl.u32 %v165_v56, %v181_v57  ;;  %v186_v61 = vadd.s32 127, %v185_v58 }
  0xc2   :  { %v184_v49 = vor.u32 %v183_v60, %v182_v59  ;;  %v187_v62 = vshll.u32 %v186_v61, 23  ;;  %638 = vmatpush.bf16.msra.mxu2 %v784_v52 }
  0xc4   :  { %v188_v63 = vor.u32 4788187, %v187_v62  ;;  %v191_v2 = vcvt.s32.f32 %v184_v49 }
  0xc6   :  { %v189_v1 = vand.u32 2147483647, %v188_v63  ;;  %639 = vmatpush.bf16.msra.mxu2 %v783_v55 }
  0xc8   :  { %v192_v3 = vmul.f32 %v191_v2, %v189_v1 }
  0xca   :  { %v193_v4 = vxor.u32 2147483648, %v192_v3 }
  0xcc   :  { %v194_v5 = vsel %vm73_vm12, %v193_v4, %v192_v3 }
  0xcd   :  { %v197_v8 = vsel %vm72_vm13, %v949_v6, %v194_v5  ;;  %v805_v6 = vld [vmem:[%s1030_s3] ss:$0 sm:$0xff] }
  0xce   :  { %v199_v9 = vmul.f32 %v197_v8, %v197_v8 }
  0xd0   :  { %v200_v10 = vmul.f32 -0.001358992, %v199_v9  ;;  %v207_v11 = vmul.f32 -0.00019511016, %v199_v9 }
  0xd2   :  { %v201_v13 = vadd.f32 0.041655596, %v200_v10  ;;  %v208_v15 = vadd.f32 0.008332121, %v207_v11 }
  0xd4   :  { %v202_v17 = vmul.f32 %v201_v13, %v199_v9  ;;  %v209_v18 = vmul.f32 %v208_v15, %v199_v9 }
  0xd6   :  { %v203_v19 = vadd.f32 -0.4999988, %v202_v17  ;;  %v210_v20 = vadd.f32 -0.16666654, %v209_v18 }
  0xd8   :  { %v204_v22 = vmul.f32 %v203_v19, %v199_v9  ;;  %v211_v24 = vmul.f32 %v210_v20, %v199_v9 }
  0xda   :  { %v205_v27 = vadd.f32 1.0, %v204_v22  ;;  %v212_v14 = vadd.f32 1.0, %v211_v24 }
  0xdc   :  { %v213_v30 = vmul.f32 %v212_v14, %v197_v8  ;;  %v221_v31 = vxor.u32 2147483648, %v205_v27 }
  0xde   :  { %v218_v32 = vxor.u32 2147483648, %v213_v30  ;;  %v378_v34 = vsel %vm376_vm2, %v221_v31, %v213_v30  ;;  %v222_v36 = vsel %vm220_vm3, %v221_v31, %v213_v30 }
  0xe0   :  { %v375_v33 = vsel %vm373_vm1, %v205_v27, %v218_v32  ;;  %v219_v35 = vsel %vm217_vm15, %v205_v27, %v218_v32 }
  0xe1   :  { %v379_v37 = vsel %vm372_vm0, %v375_v33, %v378_v34  ;;  %v223_v38 = vsel %vm216_vm14, %v219_v35, %v222_v36 }
  0xe2   :  { %v380_v39 = vsel %vm214_vm4, nan, %v379_v37  ;;  %v224_v40 = vsel %vm214_vm4, nan, %v223_v38 }
  0xe3   :  { %v381_v23 = vpack.c.bf16 %v380_v39, %v380_v39  ;;  %v225_v26 = vpack.c.bf16 %v224_v40, %v224_v40 }
  0xe5   :  { %470 = vmatmul.bf16.vlgmr.msra.gmra.mxu0 %v381_v23  ;;  %531 = vmatmul.bf16.vlgmr.msra.gmra.mxu1 %v225_v26 }
 0x162   :  { %v471_v47 = vpop.f32.mrf.mxu0  ;;  %v532_v44 = vpop.f32.mrf.mxu1 }
 0x163   :  { %v533_v48 = vadd.f32 %v532_v44, %v471_v47 }
 0x165   :  { %v540_v51 = vadd.f32 %v805_v6, %v533_v48 }
 0x167   :  { %v734_v45 = vmul.f32 -1.442695, %v540_v51 }
 0x169   :  { %807 = vpow2.f32 %v734_v45 }
 0x16a   :  { %v473_v53 = vpop.f32.mrf.mxu0  ;;  %v534_v54 = vpop.f32.mrf.mxu1 }
 0x16f   :  { %v808_v25 = vpop.eup %807 }
 0x170   :  { %v544_v56 = vadd.f32 1.0, %v808_v25 }
 0x172   :  { %809 = vrcp.f32 %v544_v56  ;;  %v556_v60 = vand.u32 2147483648, %v544_v56  ;;  %v554_v49 = vand.u32 2147483647, %v544_v56  ;;  %vm550_vm6 = vweird.f32 %v544_v56 }
 0x174   :  { %v557_v63 = vor.u32 1.1754944e-38, %v556_v60  ;;  %vm555_vm8 = vcmp.eq.f32.partialorder %v554_v49, 8.507059e+37 }
 0x178   :  { %v810_v57 = vpop.eup %809 }
 0x179   :  { %v546_v58 = vmul.f32 %v810_v57, %v544_v56  ;;  %vm551_vm5 = vweird.f32 %v810_v57 }
 0x17a   :  { %vm552_vm7 = vmor %vm550_vm6, %vm551_vm5 }
 0x17b   :  { %v547_v59 = vsub.f32 1.0, %v546_v58 }
 0x17d   :  { %v548_v61 = vmul.f32 %v810_v57, %v547_v59 }
 0x17f   :  { %v549_v62 = vadd.f32 %v810_v57, %v548_v61 }
 0x181   :  { %v553_v1 = vsel %vm552_vm7, %v810_v57, %v549_v62 }
 0x182   :  { %v558_v2 = vsel %vm555_vm8, %v557_v63, %v553_v1 }
 0x183   :  { %v560_v3 = vmul.f32 %v558_v2, %v540_v51 }
 0x185   :  { %v561_v4 = vpack.c.bf16 %v560_v3, %v560_v3 }
 0x187   :  { %562 = vst [vmem:[#allocation2] sm:$0xf] %v561_v4 }
 0x18e   :  { %v563_v5 = vld [vmem:[#allocation2] sm:$0xf] }
 0x18f   :  { %640 = vmatmul.bf16.vlgmr.msra.gmra.mxu2 %v563_v5 }
 0x212   :  { %v641_v8 = vpop.f32.mrf.mxu2 }
 0x213   :  { %v642_v9 = vadd.f32 %v806_v7, %v641_v8 }
 0x215   :  { %645 = vst [vmem:[#allocation8] sm:$0xff] %v642_v9 }
 0x216   :  { %656 = dma.vmem_to_hbm [thread:$0]  %s652_s13, 128, %s654_s16, [#allocation5]  }
 0x21a   :  { %v643_v10 = vpop.f32.mrf.mxu2 }
 0x21b   :  { %887 = dma.done.wait [#allocation5], 128  }
 0x21c   :  { %888 = vsyncadd [#allocation5], 4294967168 }
 0x21d   :  { %661 = vsyncpa [#allocation4], 1 }
 0x21e   :  { %662 = vsyncpa [#allocation7], 1 }
 0x21f   :  { %663 = vsyncpa [#allocation5], 1 }

</bundles_post_ra>
